<compile_context>
chip_gen: v7x
topology: tpu7x:2x2x1
jax: 0.10.0
libtpu: 0.0.40
codegen_flags: <defaults>
</compile_context>

<pallas_src>
from functools import partial

import jax
import jax.numpy as jnp
from jax.experimental import pallas as pl
from jax.experimental.pallas import tpu as pltpu

LANE = 128
MAX_TILE_B = 1024   # ~0.5 MiB of activation rows per tile at 128 lanes


def _round_up(n, m):
    return ((n + m - 1) // m) * m


def _softplus(v):
    # Numerically stable, matches torch.nn.Softplus / jax.nn.softplus:
    # softplus(v) = max(v, 0) + log1p(exp(-|v|))
    return jnp.maximum(v, 0.0) + jnp.log1p(jnp.exp(-jnp.abs(v)))


def _make_kernel(T, D):
    inv_T = 1.0 / float(T)

    def kernel(t_ref, x_ref, w1x_ref, w1t_ref, b1_ref, w2_ref, b2_ref,
               w3_ref, b3_ref, o_ref):
        # Scalar timestep from SMEM; fold its contribution into the first bias.
        t_scaled = t_ref[0, 0] * inv_T                       # scalar (sreg)
        b1_eff = b1_ref[...] + t_scaled * w1t_ref[...]       # (1, HP), VPU add

        x = x_ref[...]                                        # (TILE_B, D), unpadded
        w1x = w1x_ref[...]                                    # (D, HP)
        tile_b = x.shape[0]
        hp = w1x.shape[1]

        if D % LANE == 0:
            # Lane-aligned input features: straight MXU matmul.
            pre1 = jnp.dot(x, w1x, preferred_element_type=jnp.float32) + b1_eff
        else:
            # Tiny / lane-unaligned D: D rank-1 broadcast-FMA updates on the VPU
            # instead of a K=D matmul, keeping every MXU op 128-aligned.
            pre1 = jnp.broadcast_to(b1_eff, (tile_b, hp))
            for d in range(D):                                # static unroll, D small
                pre1 = pre1 + x[:, d:d + 1] * w1x[d:d + 1, :]

        h1 = _softplus(pre1)                                  # (TILE_B, HP)
        h2 = _softplus(
            jnp.dot(h1, w2_ref[...], preferred_element_type=jnp.float32)
            + b2_ref[...])
        y = (jnp.dot(h2, w3_ref[...], preferred_element_type=jnp.float32)
             + b3_ref[...])                                   # (TILE_B, OP)
        # Slice back to the real output width; masked store when D < 128, but
        # HBM bytes are the compact (TILE_B, D) tile.
        o_ref[...] = y[:, :D].astype(o_ref.dtype)

    return kernel


def prepare_params(params, input_dim):
    """Pad / split the weights ONCE (call outside the sampling loop).

    Returns (w1x, w1t, b1p, w2p, b2p, w3p, b3p) with the hidden dim padded to a
    multiple of 128 lanes and w1 split into its x-rows and its timestep row.
    Padded lanes are zero so they contribute exactly zero at every matmul.
    """
    w1, b1, w2, b2, w3, b3 = params
    D = input_dim
    H = w1.shape[1]
    HP = _round_up(H, LANE)          # padded hidden features
    OP = _round_up(D, LANE)          # lane-padded matmul N for the last layer
    f32 = jnp.float32

    w1x = jnp.zeros((D, HP), f32).at[:, :H].set(w1[:D].astype(f32))
    w1t = jnp.zeros((1, HP), f32).at[:, :H].set(w1[D:D + 1].astype(f32))
    b1p = jnp.zeros((1, HP), f32).at[:, :H].set(jnp.reshape(b1, (1, H)).astype(f32))
    w2p = jnp.zeros((HP, HP), f32).at[:H, :H].set(w2.astype(f32))
    b2p = jnp.zeros((1, HP), f32).at[:, :H].set(jnp.reshape(b2, (1, H)).astype(f32))
    w3p = jnp.zeros((HP, OP), f32).at[:H, :D].set(w3.astype(f32))
    b3p = jnp.zeros((1, OP), f32).at[:, :D].set(jnp.reshape(b3, (1, D)).astype(f32))
    return (w1x, w1t, b1p, w2p, b2p, w3p, b3p)


@partial(jax.jit, static_argnames=("T",))
def noise_predictor_pallas(x, t, prepared, T):
    """x: (B, input_dim) f32; t: scalar / (1,) timestep shared over the batch;
    prepared: output of prepare_params(params, input_dim)."""
    B, D = x.shape
    w1x, w1t, b1p, w2p, b2p, w3p, b3p = prepared
    HP = w1x.shape[1]
    OP = w3p.shape[1]

    # --- batch tiling: big tiles, but >= 2 grid steps when possible so the
    # "parallel" axis shards across the two v7x TensorCores. --------------------
    B8 = _round_up(B, 8)
    if B8 <= 8:
        TILE_B = 8
    elif B8 <= 2 * MAX_TILE_B:
        TILE_B = max(8, _round_up(pl.cdiv(B8, 2), 8))
    else:
        TILE_B = MAX_TILE_B
    num_tiles = pl.cdiv(B, TILE_B)
    B_pad = num_tiles * TILE_B

    f32 = jnp.float32
    x_in = x.astype(f32)
    if B_pad != B:
        # Only the batch axis is ever padded (at most TILE_B-1 rows), never the
        # feature axis, so no 32-64x inflated HBM copies of x / output.
        x_in = jnp.pad(x_in, ((0, B_pad - B), (0, 0)))

    # Single shared timestep -> SMEM scalar.
    # TODO(synk): per-sample t (shape (B,)) would need the rank-1 t_col * w1_t
    # add in VMEM instead of the folded-bias path; the module uses a shared t.
    t_smem = jnp.asarray(t, f32).reshape(-1)[:1].reshape(1, 1)

    grid = (num_tiles,)
    in_specs = [
        pl.BlockSpec(memory_space=pltpu.MemorySpace.SMEM),      # t  (1,1) scalar
        pl.BlockSpec((TILE_B, D), lambda i: (i, 0)),            # x tile (unpadded D)
        pl.BlockSpec((D, HP), lambda i: (0, 0)),                # w1x  (resident)
        pl.BlockSpec((1, HP), lambda i: (0, 0)),                # w1 timestep row
        pl.BlockSpec((1, HP), lambda i: (0, 0)),                # b1
        pl.BlockSpec((HP, HP), lambda i: (0, 0)),               # w2
        pl.BlockSpec((1, HP), lambda i: (0, 0)),                # b2
        pl.BlockSpec((HP, OP), lambda i: (0, 0)),               # w3 (lane-padded N)
        pl.BlockSpec((1, OP), lambda i: (0, 0)),                # b3
    ]
    out_specs = pl.BlockSpec((TILE_B, D), lambda i: (i, 0))     # compact output

    # TODO(synk): for HP >= ~2048 add pipeline_mode=pl.Buffered(1) on the weight
    # specs and a K-tiled grid axis for w2 to stay inside v7x's 64 MiB VMEM.
    out = pl.pallas_call(
        _make_kernel(T, D),
        out_shape=jax.ShapeDtypeStruct((B_pad, D), f32),
        grid=grid,
        in_specs=in_specs,
        out_specs=out_specs,
        compiler_params=pltpu.CompilerParams(
            dimension_semantics=("parallel",),
            vmem_limit_bytes=32 * 1024 * 1024),
    )(t_smem, x_in, w1x, w1t, b1p, w2p, b2p, w3p, b3p)

    if B_pad != B:
        out = out[:B]
    return out


def init_params(key, input_dim, hidden_dim):
    """Deterministic synthetic init (uniform, roughly like torch's default)."""
    def linear(k, fan_in, fan_out):
        kw, kb = jax.random.split(k)
        bound = 1.0 / jnp.sqrt(jnp.float32(fan_in))
        w = jax.random.uniform(kw, (fan_in, fan_out), jnp.float32, -bound, bound)
        b = jax.random.uniform(kb, (1, fan_out), jnp.float32, -bound, bound)
        return w, b

    k1, k2, k3 = jax.random.split(key, 3)
    w1, b1 = linear(k1, input_dim + 1, hidden_dim)
    w2, b2 = linear(k2, hidden_dim, hidden_dim)
    w3, b3 = linear(k3, hidden_dim, input_dim)
    return (w1, b1, w2, b2, w3, b3)


def noise_predictor_ref(x, t, params, T):
    """Pure-JAX reference mirroring the PyTorch forward, for validation."""
    B = x.shape[0]
    t2d = jnp.broadcast_to(
        jnp.asarray(t, jnp.float32).reshape(-1)[:1], (B,)).reshape(B, 1) / T
    xt = jnp.concatenate([x, t2d], axis=1)
    w1, b1, w2, b2, w3, b3 = params
    h1 = jax.nn.softplus(xt @ w1 + b1)
    h2 = jax.nn.softplus(h1 @ w2 + b2)
    return h2 @ w3 + b3


if __name__ == "__main__":
    B, INPUT_DIM, HIDDEN_DIM, T = 8, 4, 32, 100

    key = jax.random.PRNGKey(0)
    kx, kt, kp = jax.random.split(key, 3)

    x = jax.random.normal(kx, (B, INPUT_DIM), jnp.float32)
    t = jax.random.randint(kt, (1,), 0, T).astype(jnp.float32)  # shared timestep
    params = init_params(kp, INPUT_DIM, HIDDEN_DIM)

    prepared = prepare_params(params, INPUT_DIM)   # pad / split weights ONCE

    out = noise_predictor_pallas(x, t, prepared, T)
    out = jax.block_until_ready(out)

    ref = noise_predictor_ref(x, t, params, T)
    assert out.shape == (B, INPUT_DIM)
    assert jnp.allclose(out, ref, atol=1e-5, rtol=1e-5), "mismatch vs. JAX reference"

    print("KERNEL_OK")
</pallas_src>

<mosaic_0001>
module attributes {stable_mosaic.version = 11 : i64} {
  func.func @kernel(%arg0: i32, %arg1: memref<1x1xf32, #tpu.memory_space<smem>>, %arg2: memref<8x4xf32, #tpu.memory_space<vmem>>, %arg3: memref<4x128xf32, #tpu.memory_space<vmem>>, %arg4: memref<1x128xf32, #tpu.memory_space<vmem>>, %arg5: memref<1x128xf32, #tpu.memory_space<vmem>>, %arg6: memref<128x128xf32, #tpu.memory_space<vmem>>, %arg7: memref<1x128xf32, #tpu.memory_space<vmem>>, %arg8: memref<128x128xf32, #tpu.memory_space<vmem>>, %arg9: memref<1x128xf32, #tpu.memory_space<vmem>>, %arg10: memref<8x4xf32, #tpu.memory_space<vmem>>) attributes {dimension_semantics = [#tpu.dimension_semantics<parallel>], iteration_bounds = array<i64: 1>, scalar_prefetch = 0 : i64, scratch_operands = 0 : i64, tpu.core_type = #tpu.core_type<tc>, window_params = [{transform_indices = @transform_0, window_bounds = array<i64: 1, 1>}, {transform_indices = @transform_1, window_bounds = array<i64: 8, 4>}, {pipeline_mode = #tpu.pipeline_mode<synchronous>, transform_indices = @transform_2, window_bounds = array<i64: 4, 128>}, {pipeline_mode = #tpu.pipeline_mode<synchronous>, transform_indices = @transform_3, window_bounds = array<i64: 1, 128>}, {pipeline_mode = #tpu.pipeline_mode<synchronous>, transform_indices = @transform_4, window_bounds = array<i64: 1, 128>}, {pipeline_mode = #tpu.pipeline_mode<synchronous>, transform_indices = @transform_5, window_bounds = array<i64: 128, 128>}, {pipeline_mode = #tpu.pipeline_mode<synchronous>, transform_indices = @transform_6, window_bounds = array<i64: 1, 128>}, {pipeline_mode = #tpu.pipeline_mode<synchronous>, transform_indices = @transform_7, window_bounds = array<i64: 128, 128>}, {pipeline_mode = #tpu.pipeline_mode<synchronous>, transform_indices = @transform_8, window_bounds = array<i64: 1, 128>}, {transform_indices = @transform_9, window_bounds = array<i64: 8, 4>}]} {
    %c0 = arith.constant 0 : index
    %c0_0 = arith.constant 0 : index
    %0 = memref.load %arg1[%c0, %c0_0] : memref<1x1xf32, #tpu.memory_space<smem>>
    %cst = arith.constant 0.00999999977 : f32
    %1 = arith.mulf %0, %cst : f32
    %c0_1 = arith.constant 0 : index
    %c0_2 = arith.constant 0 : index
    %2 = vector.load %arg5[%c0_1, %c0_2] : memref<1x128xf32, #tpu.memory_space<vmem>>, vector<1x128xf32>
    %c0_3 = arith.constant 0 : index
    %c0_4 = arith.constant 0 : index
    %3 = vector.load %arg4[%c0_3, %c0_4] : memref<1x128xf32, #tpu.memory_space<vmem>>, vector<1x128xf32>
    %4 = vector.broadcast %1 : f32 to vector<1x128xf32>
    %5 = arith.mulf %4, %3 : vector<1x128xf32>
    %6 = arith.addf %2, %5 : vector<1x128xf32>
    %c0_5 = arith.constant 0 : index
    %c0_6 = arith.constant 0 : index
    %7 = vector.load %arg2[%c0_5, %c0_6] : memref<8x4xf32, #tpu.memory_space<vmem>>, vector<8x4xf32>
    %c0_7 = arith.constant 0 : index
    %c0_8 = arith.constant 0 : index
    %8 = vector.load %arg3[%c0_7, %c0_8] : memref<4x128xf32, #tpu.memory_space<vmem>>, vector<4x128xf32>
    %9 = vector.shape_cast %6 : vector<1x128xf32> to vector<1x128xf32>
    %10 = vector.broadcast %9 : vector<1x128xf32> to vector<8x128xf32>
    %11 = vector.extract_strided_slice %7 {offsets = [0, 0], sizes = [8, 1], strides = [1, 1]} : vector<8x4xf32> to vector<8x1xf32>
    %12 = vector.extract_strided_slice %8 {offsets = [0, 0], sizes = [1, 128], strides = [1, 1]} : vector<4x128xf32> to vector<1x128xf32>
    %13 = vector.broadcast %11 : vector<8x1xf32> to vector<8x128xf32>
    %14 = vector.broadcast %12 : vector<1x128xf32> to vector<8x128xf32>
    %15 = arith.mulf %13, %14 : vector<8x128xf32>
    %16 = arith.addf %10, %15 : vector<8x128xf32>
    %17 = vector.extract_strided_slice %7 {offsets = [0, 1], sizes = [8, 1], strides = [1, 1]} : vector<8x4xf32> to vector<8x1xf32>
    %18 = vector.extract_strided_slice %8 {offsets = [1, 0], sizes = [1, 128], strides = [1, 1]} : vector<4x128xf32> to vector<1x128xf32>
    %19 = vector.broadcast %17 : vector<8x1xf32> to vector<8x128xf32>
    %20 = vector.broadcast %18 : vector<1x128xf32> to vector<8x128xf32>
    %21 = arith.mulf %19, %20 : vector<8x128xf32>
    %22 = arith.addf %16, %21 : vector<8x128xf32>
    %23 = vector.extract_strided_slice %7 {offsets = [0, 2], sizes = [8, 1], strides = [1, 1]} : vector<8x4xf32> to vector<8x1xf32>
    %24 = vector.extract_strided_slice %8 {offsets = [2, 0], sizes = [1, 128], strides = [1, 1]} : vector<4x128xf32> to vector<1x128xf32>
    %25 = vector.broadcast %23 : vector<8x1xf32> to vector<8x128xf32>
    %26 = vector.broadcast %24 : vector<1x128xf32> to vector<8x128xf32>
    %27 = arith.mulf %25, %26 : vector<8x128xf32>
    %28 = arith.addf %22, %27 : vector<8x128xf32>
    %29 = vector.extract_strided_slice %7 {offsets = [0, 3], sizes = [8, 1], strides = [1, 1]} : vector<8x4xf32> to vector<8x1xf32>
    %30 = vector.extract_strided_slice %8 {offsets = [3, 0], sizes = [1, 128], strides = [1, 1]} : vector<4x128xf32> to vector<1x128xf32>
    %31 = vector.broadcast %29 : vector<8x1xf32> to vector<8x128xf32>
    %32 = vector.broadcast %30 : vector<1x128xf32> to vector<8x128xf32>
    %33 = arith.mulf %31, %32 : vector<8x128xf32>
    %34 = arith.addf %28, %33 : vector<8x128xf32>
    %cst_9 = arith.constant 0.000000e+00 : f32
    %35 = vector.broadcast %cst_9 : f32 to vector<8x128xf32>
    %36 = arith.maximumf %34, %35 : vector<8x128xf32>
    %37 = math.absf %34 : vector<8x128xf32>
    %cst_10 = arith.constant 0.000000e+00 : f32
    %38 = vector.broadcast %cst_10 : f32 to vector<8x128xf32>
    %39 = arith.subf %38, %37 : vector<8x128xf32>
    %40 = math.exp %39 : vector<8x128xf32>
    %41 = math.log1p %40 : vector<8x128xf32>
    %42 = arith.addf %36, %41 : vector<8x128xf32>
    %c0_11 = arith.constant 0 : index
    %c0_12 = arith.constant 0 : index
    %43 = vector.load %arg6[%c0_11, %c0_12] : memref<128x128xf32, #tpu.memory_space<vmem>>, vector<128x128xf32>
    %cst_13 = arith.constant dense<0.000000e+00> : vector<8x128xf32>
    %44 = tpu.matmul %42, %43, %cst_13 {dimension_numbers = #tpu.dot_dimension_numbers<[1], [0], [0], [1], [0, 0, 1, 1], [], []>} : vector<8x128xf32>, vector<128x128xf32>, vector<8x128xf32> -> vector<8x128xf32>
    %c0_14 = arith.constant 0 : index
    %c0_15 = arith.constant 0 : index
    %45 = vector.load %arg7[%c0_14, %c0_15] : memref<1x128xf32, #tpu.memory_space<vmem>>, vector<1x128xf32>
    %46 = vector.broadcast %45 : vector<1x128xf32> to vector<8x128xf32>
    %47 = arith.addf %44, %46 : vector<8x128xf32>
    %cst_16 = arith.constant 0.000000e+00 : f32
    %48 = vector.broadcast %cst_16 : f32 to vector<8x128xf32>
    %49 = arith.maximumf %47, %48 : vector<8x128xf32>
    %50 = math.absf %47 : vector<8x128xf32>
    %cst_17 = arith.constant 0.000000e+00 : f32
    %51 = vector.broadcast %cst_17 : f32 to vector<8x128xf32>
    %52 = arith.subf %51, %50 : vector<8x128xf32>
    %53 = math.exp %52 : vector<8x128xf32>
    %54 = math.log1p %53 : vector<8x128xf32>
    %55 = arith.addf %49, %54 : vector<8x128xf32>
    %c0_18 = arith.constant 0 : index
    %c0_19 = arith.constant 0 : index
    %56 = vector.load %arg8[%c0_18, %c0_19] : memref<128x128xf32, #tpu.memory_space<vmem>>, vector<128x128xf32>
    %cst_20 = arith.constant dense<0.000000e+00> : vector<8x128xf32>
    %57 = tpu.matmul %55, %56, %cst_20 {dimension_numbers = #tpu.dot_dimension_numbers<[1], [0], [0], [1], [0, 0, 1, 1], [], []>} : vector<8x128xf32>, vector<128x128xf32>, vector<8x128xf32> -> vector<8x128xf32>
    %c0_21 = arith.constant 0 : index
    %c0_22 = arith.constant 0 : index
    %58 = vector.load %arg9[%c0_21, %c0_22] : memref<1x128xf32, #tpu.memory_space<vmem>>, vector<1x128xf32>
    %59 = vector.broadcast %58 : vector<1x128xf32> to vector<8x128xf32>
    %60 = arith.addf %57, %59 : vector<8x128xf32>
    %61 = vector.extract_strided_slice %60 {offsets = [0, 0], sizes = [8, 4], strides = [1, 1]} : vector<8x128xf32> to vector<8x4xf32>
    %c0_23 = arith.constant 0 : index
    %c0_24 = arith.constant 0 : index
    %62 = vector.load %arg10[%c0_23, %c0_24] : memref<8x4xf32, #tpu.memory_space<vmem>>, vector<8x4xf32>
    tpu.vector_store %arg10[%c0_23, %c0_24], %61 {strides = array<i32>} : memref<8x4xf32, #tpu.memory_space<vmem>>, vector<8x4xf32>,
    return
  }
  func.func @transform_0(%arg0: i32) -> (i32, i32) {
    %c0_i32 = arith.constant 0 : i32
    %c0_i32_0 = arith.constant 0 : i32
    %c0_i32_1 = arith.constant 0 : i32
    return %c0_i32, %c0_i32_0 : i32, i32
  }
  func.func @transform_1(%arg0: i32) -> (i32, i32) {
    %c0_i32 = arith.constant 0 : i32
    %c0_i32_0 = arith.constant 0 : i32
    return %arg0, %c0_i32 : i32, i32
  }
  func.func @transform_2(%arg0: i32) -> (i32, i32) {
    %c0_i32 = arith.constant 0 : i32
    %c0_i32_0 = arith.constant 0 : i32
    %c0_i32_1 = arith.constant 0 : i32
    return %c0_i32, %c0_i32_0 : i32, i32
  }
  func.func @transform_3(%arg0: i32) -> (i32, i32) {
    %c0_i32 = arith.constant 0 : i32
    %c0_i32_0 = arith.constant 0 : i32
    %c0_i32_1 = arith.constant 0 : i32
    return %c0_i32, %c0_i32_0 : i32, i32
  }
  func.func @transform_4(%arg0: i32) -> (i32, i32) {
    %c0_i32 = arith.constant 0 : i32
    %c0_i32_0 = arith.constant 0 : i32
    %c0_i32_1 = arith.constant 0 : i32
    return %c0_i32, %c0_i32_0 : i32, i32
  }
  func.func @transform_5(%arg0: i32) -> (i32, i32) {
    %c0_i32 = arith.constant 0 : i32
    %c0_i32_0 = arith.constant 0 : i32
    %c0_i32_1 = arith.constant 0 : i32
    return %c0_i32, %c0_i32_0 : i32, i32
  }
  func.func @transform_6(%arg0: i32) -> (i32, i32) {
    %c0_i32 = arith.constant 0 : i32
    %c0_i32_0 = arith.constant 0 : i32
    %c0_i32_1 = arith.constant 0 : i32
    return %c0_i32, %c0_i32_0 : i32, i32
  }
  func.func @transform_7(%arg0: i32) -> (i32, i32) {
    %c0_i32 = arith.constant 0 : i32
    %c0_i32_0 = arith.constant 0 : i32
    %c0_i32_1 = arith.constant 0 : i32
    return %c0_i32, %c0_i32_0 : i32, i32
  }
  func.func @transform_8(%arg0: i32) -> (i32, i32) {
    %c0_i32 = arith.constant 0 : i32
    %c0_i32_0 = arith.constant 0 : i32
    %c0_i32_1 = arith.constant 0 : i32
    return %c0_i32, %c0_i32_0 : i32, i32
  }
  func.func @transform_9(%arg0: i32) -> (i32, i32) {
    %c0_i32 = arith.constant 0 : i32
    %c0_i32_0 = arith.constant 0 : i32
    return %arg0, %c0_i32 : i32, i32
  }
}

</mosaic_0001>

<bundles_post_ra>
// kernel: noise_predictor_pallas.1
= control target key start
LH: loop header
LB: loop body
LE: loop exit
PB: predicated region body
PF: predicated region fallthrough
CT: control target
= control target key end

     0   :  { %15 = vsyncpa [#allocation4], 0  ;;  %s692_s0 = inlined_call_operand.<no memory space> [shape: f32[1,1], index: 0, kind: input, shape index: {}]   ;;  %s693_s1 = inlined_call_operand.vmem [shape: f32[8,4], index: 1, kind: input, shape index: {}]   ;;  %s694_s2 = inlined_call_operand.vmem [shape: f32[4,128], index: 2, kind: input, shape index: {}]   ;;  %s695_s3 = inlined_call_operand.vmem [shape: f32[1,128], index: 3, kind: input, shape index: {}]   ;;  %s696_s4 = inlined_call_operand.vmem [shape: f32[1,128], index: 4, kind: input, shape index: {}]   ;;  %s697_s5 = inlined_call_operand.hbm [shape: f32[128,128], index: 5, kind: input, shape index: {}]   ;;  %s698_s6 = inlined_call_operand.vmem [shape: f32[1,128], index: 6, kind: input, shape index: {}]   ;;  %s699_s7 = inlined_call_operand.hbm [shape: f32[128,128], index: 7, kind: input, shape index: {}]   ;;  %s700_s8 = inlined_call_operand.vmem [shape: f32[1,128], index: 8, kind: input, shape index: {}]   ;;  %s701_s9 = inlined_call_operand.vmem [shape: f32[8,4], index: 9, kind: output, shape index: {}]  }
   0x1   :  { %16 = vsyncpa [#allocation6], 0  ;;  %s567_s30 = smov [#allocation3]   ;;  %s519_s13 = scalar_lea.hbm %s697_s5, 2048 }
   0x2   :  { %s32_s10 = sshll.u32 %s567_s30, 4  ;;  %p520_p0 = scmp.ne.s32.totalorder %s697_s5, %s519_s13  ;;  %s33_s10 = int_to_ptr.vmem [resolvable:$true] %s32_s10 }
   0x3   :  { %p523_p1 = scmp.lt.u32.totalorder %s519_s13, %s697_s5 }
   0x5   :  { %p525_p2 = pnand %p523_p1, %p520_p0 }
   0x7   :  { %528 = shalt.err (!%p525_p2)
}
   0x8   :  { %s529_s18 = scalar_lea.vmem %s33_s10, 2048  ;;  %p534_p4 = scmp.lt.s32.totalorder %s33_s10, %s33_s10 }
   0x9   :  { %p530_p3 = scmp.ne.s32.totalorder %s33_s10, %s529_s18  ;;  %p535_p5 = scmp.lt.s32.totalorder %s529_s18, %s529_s18 }
   0xb   :  { %p536_p6 = por %p535_p5, %p534_p4 }
   0xd   :  { %p537_p7 = pnand %p536_p6, %p530_p3 }
   0xf   :  { %540 = shalt.err (!%p537_p7)
}
  0x10   :  { %s568_s19 = smov 128   ;;  %s569_s20 = smov 8  }
  0x11   :  { %38 = dma.hbm_to_vmem [thread:$0]  %s697_s5, 2048, %s33_s10, [#allocation4], %s568_s19, %s568_s19, %s569_s20  }
  0x12   :  { %s570_s23 = smov [#allocation5]   ;;  %s541_s27 = scalar_lea.hbm %s699_s7, 2048 }
  0x13   :  { %s46_s24 = sshll.u32 %s570_s23, 4  ;;  %p542_p8 = scmp.ne.s32.totalorder %s699_s7, %s541_s27  ;;  %s47_s24 = int_to_ptr.vmem [resolvable:$true] %s46_s24 }
  0x14   :  { %p545_p9 = scmp.lt.u32.totalorder %s541_s27, %s699_s7 }
  0x16   :  { %p547_p10 = pnand %p545_p9, %p542_p8 }
  0x18   :  { %550 = shalt.err (!%p547_p10)
}
  0x19   :  { %s551_s12 = scalar_lea.vmem %s47_s24, 2048  ;;  %p556_p12 = scmp.lt.s32.totalorder %s47_s24, %s47_s24 }
  0x1a   :  { %p552_p11 = scmp.ne.s32.totalorder %s47_s24, %s551_s12  ;;  %p557_p13 = scmp.lt.s32.totalorder %s551_s12, %s551_s12 }
  0x1c   :  { %p558_p0 = por %p557_p13, %p556_p12 }
  0x1e   :  { %p559_p1 = pnand %p558_p0, %p552_p11 }
  0x20   :  { %562 = shalt.err (!%p559_p1)
}
  0x21   :  { %52 = dma.hbm_to_vmem [thread:$0]  %s699_s7, 2048, %s47_s24, [#allocation6], %s568_s19, %s568_s19, %s569_s20  }
  0x22   :  { %563 = dma.done.wait [#allocation4], 2048  }
  0x23   :  { %564 = vsyncadd [#allocation4], 4294965248 }
  0x24   :  { %565 = dma.done.wait [#allocation6], 2048  }
  0x25   :  { %566 = vsyncadd [#allocation6], 4294965248  ;;  %v571_v0 = vmov 0   ;;  %v572_v1 = vmov 2   ;;  %v68_v2 = vld [vmem:[%s693_s1] sm:$0xff]  ;;  %v573_v3 = vmov 1   ;;  %v71_v31 = vlaneseq }
  0x26   :  { %506 = vset.pattern.permute.xlu0 %v571_v0  ;;  %508 = vset.pattern.permute.xlu1 %v572_v1  ;;  %v574_v4 = vmov 3   ;;  %v132_v5 = vld [vmem:[#allocation3] sm:$0xff]  ;;  %v133_v6 = vld [vmem:[#allocation3 + $0x8] sm:$0xff]  ;;  %v575_v8 = vmov 0.0|0.0   ;;  %v134_v9 = vld [vmem:[#allocation3 + $0x10] sm:$0xff]  ;;  %vm576_vm0 = vmmov 0  }
  0x27   :  { %78 = vperm.xlu0 %506, %v68_v2   ;;  %98 = vperm.xlu1 %508, %v68_v2   ;;  %v448_v7 = vpack.c.bf16 %v133_v6, %v132_v5  ;;  %v135_v10 = vld [vmem:[#allocation3 + $0x18] sm:$0xff]  ;;  %v136_v12 = vld [vmem:[#allocation3 + $0x20] sm:$0xff]  ;;  %v137_v13 = vld [vmem:[#allocation3 + $0x28] sm:$0xff]  ;;  %v577_v14 = vmov 0.0   ;;  %s62_s15 = smul.f32 0.01, %s692_s0 }
  0x28   :  { %447 = vmatprep.subr.bf16.mxu0 %v575_v8  ;;  %471 = vmatprep.subr.bf16.mxu1 %v575_v8  ;;  %v451_v11 = vpack.c.bf16 %v135_v10, %v134_v9  ;;  %v454_v15 = vpack.c.bf16 %v137_v13, %v136_v12  ;;  %v138_v16 = vld [vmem:[#allocation3 + $0x30] sm:$0xff]  ;;  %v139_v17 = vld [vmem:[#allocation3 + $0x38] sm:$0xff]  ;;  %v140_v19 = vld [vmem:[#allocation3 + $0x40] sm:$0xff]  ;;  %v72_v32 = vshrl.u32 %v71_v31, 7  ;;  %vm333_vm3 = vcmask 31744  }
  0x29   :  { %449 = vmatpush3.bf16.msra.mxu0 %v448_v7  ;;  %409 = vmatprep.mubr.msk.f32.mxu0 %vm576_vm0, %v577_v14  ;;  %v457_v18 = vpack.c.bf16 %v139_v17, %v138_v16  ;;  %v141_v20 = vld [vmem:[#allocation3 + $0x48] sm:$0xff]  ;;  %v142_v22 = vld [vmem:[#allocation3 + $0x50] sm:$0xff]  ;;  %v143_v23 = vld [vmem:[#allocation3 + $0x58] sm:$0xff]  ;;  %v65_v33 = vstv %s62_s15 }
  0x2a   :  { %450 = vmatprep.subr.bf16.mxu0 %v575_v8  ;;  %444 = vmatprep.mubr.msk.f32.mxu1 %vm576_vm0, %v577_v14  ;;  %v460_v21 = vpack.c.bf16 %v141_v20, %v140_v19  ;;  %v463_v24 = vpack.c.bf16 %v143_v23, %v142_v22  ;;  %v144_v25 = vld [vmem:[#allocation3 + $0x60] sm:$0xff]  ;;  %v145_v26 = vld [vmem:[#allocation3 + $0x68] sm:$0xff]  ;;  %v146_v28 = vld [vmem:[#allocation3 + $0x70] sm:$0xff]  ;;  %v73_v35 = vsub.s32 0, %v72_v32  ;;  %v93_v41 = vsub.s32 1, %v72_v32 }
  0x2b   :  { %507 = vset.pattern.permute.xlu0 %v573_v3  ;;  %509 = vset.pattern.permute.xlu1 %v574_v4  ;;  %v466_v27 = vpack.c.bf16 %v145_v26, %v144_v25  ;;  %v147_v29 = vld [vmem:[#allocation3 + $0x78] sm:$0xff]  ;;  %v64_v34 = vld [vmem:[%s695_s3] sm:$0x1]  ;;  %v103_v43 = vsub.s32 2, %v72_v32  ;;  %v113_v45 = vsub.s32 3, %v72_v32  ;;  %v241_v12 = vld [vmem:[#allocation5 + $0x8] sm:$0xff] }
  0x2c   :  { %88 = vperm.xlu0 %507, %v68_v2   ;;  %108 = vperm.xlu1 %509, %v68_v2   ;;  %v469_v30 = vpack.c.bf16 %v147_v29, %v146_v28  ;;  %v66_v36 = vmul.f32 %v65_v33, %v64_v34  ;;  %v69_v37 = vld [vmem:[%s694_s2] sm:$0xf]  ;;  %v242_v14 = vld [vmem:[#allocation5 + $0x10] sm:$0xff]  ;;  %v255_v33 = vld [vmem:[#allocation5 + $0x78] sm:$0xff] }
  0x2d   :  { %452 = vmatpush3.bf16.msra.mxu0 %v451_v11  ;;  %v63_v38 = vld [vmem:[%s696_s4] sm:$0x1]  ;;  %v84_v39 = vrot.slane %v69_v37, %v73_v35  ;;  %v94_v48 = vrot.slane %v69_v37, %v93_v41  ;;  %v104_v49 = vrot.slane %v69_v37, %v103_v43  ;;  %v114_v50 = vrot.slane %v69_v37, %v113_v45  ;;  %v246_v20 = vld [vmem:[#allocation5 + $0x30] sm:$0xff] }
  0x2e   :  { %453 = vmatprep.subr.bf16.mxu0 %v575_v8  ;;  %v67_v40 = vadd.f32 %v66_v36, %v63_v38  ;;  %v240_v11 = vld [vmem:[#allocation5] sm:$0xff]  ;;  %v250_v26 = vld [vmem:[#allocation5 + $0x50] sm:$0xff] }
  0x2f   :  { %v472_v13 = vpack.c.bf16 %v241_v12, %v240_v11  ;;  %v244_v17 = vld [vmem:[#allocation5 + $0x20] sm:$0xff]  ;;  %v254_v32 = vld [vmem:[#allocation5 + $0x70] sm:$0xff] }
  0x30   :  { %510 = vset.pattern.permute.xlu0 %v574_v4  ;;  %v74_v46 = vrot.slane %v67_v40, %v73_v35  ;;  %v248_v23 = vld [vmem:[#allocation5 + $0x40] sm:$0xff]  ;;  %v493_v34 = vpack.c.bf16 %v255_v33, %v254_v32 }
  0x31   :  { %455 = vmatpush3.bf16.msra.mxu0 %v454_v15  ;;  %473 = vmatpush3.bf16.msra.mxu1 %v472_v13  ;;  %v243_v15 = vld [vmem:[#allocation5 + $0x18] sm:$0xff]  ;;  %v252_v29 = vld [vmem:[#allocation5 + $0x60] sm:$0xff] }
  0x32   :  { %456 = vmatprep.subr.bf16.mxu0 %v575_v8  ;;  %474 = vmatprep.subr.bf16.mxu1 %v575_v8  ;;  %v475_v16 = vpack.c.bf16 %v243_v15, %v242_v14  ;;  %v341_v35 = vld [vmem:[%s698_s6] ss:$0 sm:$0xff] }
  0x35   :  { %458 = vmatpush3.bf16.msra.mxu0 %v457_v18  ;;  %v245_v18 = vld [vmem:[#allocation5 + $0x28] sm:$0xff]  ;;  %476 = vmatpush3.bf16.msra.mxu1 %v475_v16 }
  0x36   :  { %459 = vmatprep.subr.bf16.mxu0 %v575_v8  ;;  %v478_v19 = vpack.c.bf16 %v245_v18, %v244_v17  ;;  %477 = vmatprep.subr.bf16.mxu1 %v575_v8 }
  0x39   :  { %461 = vmatpush3.bf16.msra.mxu0 %v460_v21  ;;  %v247_v21 = vld [vmem:[#allocation5 + $0x38] sm:$0xff]  ;;  %479 = vmatpush3.bf16.msra.mxu1 %v478_v19 }
  0x3a   :  { %462 = vmatprep.subr.bf16.mxu0 %v575_v8  ;;  %v481_v22 = vpack.c.bf16 %v247_v21, %v246_v20  ;;  %480 = vmatprep.subr.bf16.mxu1 %v575_v8 }
  0x3d   :  { %464 = vmatpush3.bf16.msra.mxu0 %v463_v24  ;;  %v249_v24 = vld [vmem:[#allocation5 + $0x48] sm:$0xff]  ;;  %482 = vmatpush3.bf16.msra.mxu1 %v481_v22 }
  0x3e   :  { %465 = vmatprep.subr.bf16.mxu0 %v575_v8  ;;  %v484_v25 = vpack.c.bf16 %v249_v24, %v248_v23  ;;  %483 = vmatprep.subr.bf16.mxu1 %v575_v8 }
  0x41   :  { %467 = vmatpush3.bf16.msra.mxu0 %v466_v27  ;;  %v251_v27 = vld [vmem:[#allocation5 + $0x58] sm:$0xff]  ;;  %485 = vmatpush3.bf16.msra.mxu1 %v484_v25 }
  0x42   :  { %468 = vmatprep.subr.bf16.mxu0 %v575_v8  ;;  %v487_v28 = vpack.c.bf16 %v251_v27, %v250_v26  ;;  %486 = vmatprep.subr.bf16.mxu1 %v575_v8 }
  0x45   :  { %470 = vmatpush3.bf16.msra.mxu0 %v469_v30  ;;  %v253_v30 = vld [vmem:[#allocation5 + $0x68] sm:$0xff]  ;;  %488 = vmatpush3.bf16.msra.mxu1 %v487_v28 }
  0x46   :  { %v490_v31 = vpack.c.bf16 %v253_v30, %v252_v29  ;;  %489 = vmatprep.subr.bf16.mxu1 %v575_v8 }
  0x49   :  { %491 = vmatpush3.bf16.msra.mxu1 %v490_v31 }
  0x4a   :  { %492 = vmatprep.subr.bf16.mxu1 %v575_v8 }
  0x4d   :  { %494 = vmatpush3.bf16.msra.mxu1 %v493_v34 }
  0xa6   :  { %v79_v42 = vpop.permute.xlu0 %78  ;;  %v99_v44 = vpop.permute.xlu1 %98 }
  0xa7   :  { %v85_v47 = vmul.f32 %v84_v39, %v79_v42  ;;  %v105_v55 = vmul.f32 %v104_v49, %v99_v44 }
  0xa9   :  { %v86_v53 = vadd.f32 %v85_v47, %v74_v46 }
  0xab   :  { %v89_v51 = vpop.permute.xlu0 %88  ;;  %v109_v52 = vpop.permute.xlu1 %108 }
  0xac   :  { %v95_v54 = vmul.f32 %v94_v48, %v89_v51  ;;  %v115_v57 = vmul.f32 %v114_v50, %v109_v52  ;;  %v342_v52 = vld [vmem:[%s700_s8] ss:$0 sm:$0xff] }
  0xae   :  { %v96_v56 = vadd.f32 %v95_v54, %v86_v53 }
  0xb0   :  { %v106_v58 = vadd.f32 %v105_v55, %v96_v56 }
  0xb2   :  { %v116_v59 = vadd.f32 %v115_v57, %v106_v58 }
  0xb4   :  { %v118_v60 = vand.u32 2147483647, %v116_v59  ;;  %v117_v7 = vmax.f32 %v116_v59, 0.0 }
  0xb6   :  { %v119_v61 = vsub.f32 0.0, %v118_v60 }
  0xb8   :  { %v120_v62 = vmul.f32 1.442695, %v119_v61 }
  0xba   :  { %511 = vpow2.f32 %v120_v62 }
  0xc4   :  { %v512_v63 = vpop.eup %511 }
  0xc5   :  { %v122_v0 = vadd.f32 1.0, %v512_v63  ;;  %v125_v1 = vmul.f32 -0.5, %v512_v63  ;;  %v128_v3 = vand.u32 2147483647, %v512_v63 }
  0xc7   :  { %513 = vlog2.f32 %v122_v0  ;;  %v126_v2 = vadd.f32 1.0, %v125_v1  ;;  %vm129_vm1 = vcmp.lt.f32.partialorder %v128_v3, 0.0004427343 }
  0xc9   :  { %v127_v6 = vmul.f32 %v512_v63, %v126_v2 }
  0xd1   :  { %v514_v4 = vpop.eup %513 }
  0xd2   :  { %v124_v5 = vmul.f32 0.6931472, %v514_v4 }
  0xd4   :  { %v130_v9 = vsel %vm129_vm1, %v127_v6, %v124_v5 }
  0xd5   :  { %v131_v10 = vadd.f32 %v130_v9, %v117_v7 }
  0xd7   :  { %410 = vmatmul.mubr.f32.vlgmr.msra.gmra.mrb[0].mxu0 %v131_v10 }
 0x1aa   :  { %v221_v36 = vpop.f32.mrb[0].mxu0 }
 0x1ab   :  { %v222_v37 = vadd.f32 %v341_v35, %v221_v36  ;;  %v411_v38 = vpop.f32.mrb[1].mxu0 }
 0x1ad   :  { %v226_v39 = vand.u32 2147483647, %v222_v37  ;;  %v225_v49 = vmax.f32 %v222_v37, 0.0 }
 0x1af   :  { %v227_v40 = vsub.f32 0.0, %v226_v39 }
 0x1b1   :  { %v228_v41 = vmul.f32 1.442695, %v227_v40 }
 0x1b3   :  { %515 = vpow2.f32 %v228_v41 }
 0x1bd   :  { %v516_v42 = vpop.eup %515 }
 0x1be   :  { %v230_v43 = vadd.f32 1.0, %v516_v42  ;;  %v233_v44 = vmul.f32 -0.5, %v516_v42  ;;  %v236_v46 = vand.u32 2147483647, %v516_v42 }
 0x1c0   :  { %517 = vlog2.f32 %v230_v43  ;;  %v234_v45 = vadd.f32 1.0, %v233_v44  ;;  %vm237_vm2 = vcmp.lt.f32.partialorder %v236_v46, 0.0004427343 }
 0x1c2   :  { %v235_v48 = vmul.f32 %v516_v42, %v234_v45 }
 0x1ca   :  { %v518_v47 = vpop.eup %517 }
 0x1cb   :  { %v232_v8 = vmul.f32 0.6931472, %v518_v47 }
 0x1cd   :  { %v238_v50 = vsel %vm237_vm2, %v235_v48, %v232_v8 }
 0x1ce   :  { %v239_v51 = vadd.f32 %v238_v50, %v225_v49 }
 0x1d0   :  { %445 = vmatmul.mubr.f32.vlgmr.msra.gmra.mrb[0].mxu1 %v239_v51 }
 0x2a3   :  { %v329_v53 = vpop.f32.mrb[0].mxu1 }
 0x2a4   :  { %v330_v54 = vadd.f32 %v342_v52, %v329_v53  ;;  %v446_v55 = vpop.f32.mrb[1].mxu1 }
 0x2a6   :  { %334 = vst.msk [vmem:[%s701_s9] sm:$0xff] %vm333_vm3, %v330_v54 }
 0x2a7   :  { %339 = vsyncpa [#allocation4], 1 }
 0x2a8   :  { %340 = vsyncpa [#allocation6], 1 }

</bundles_post_ra>
